<compile_context>
chip_gen: v7x
topology: tpu7x:2x2x1
jax: 0.10.0
libtpu: 0.0.40
codegen_flags: <defaults>
</compile_context>

<pallas_src>
import jax
import jax.numpy as jnp
from jax.experimental import pallas as pl
from jax.experimental.pallas import tpu as pltpu


def _dynt_kernel(tm_ref, t_out_ref, inv_out_ref):
    """Pure scalar-unit work on SMEM scalars.

    tm_ref: SMEM f32[2] = [T, min_value]
    t_out_ref: SMEM f32[1] = |T| + min_value
    inv_out_ref: SMEM f32[1] = 1 / (|T| + min_value)   (KD logits scale)
    """
    t = tm_ref[0]
    m = tm_ref[1]
    # abs() via negate+select — guaranteed scalar-core lowering.
    t_abs = jnp.where(t < jnp.float32(0.0), -t, t)
    tv = t_abs + m
    t_out_ref[0] = tv
    inv_out_ref[0] = jnp.float32(1.0) / tv


def _dynt_pallas(t: jax.Array, min_arr: jax.Array):
    """Gridless pallas_call; single packed SMEM input, two SMEM scalar outputs."""
    packed = jnp.concatenate(
        [t.astype(jnp.float32), min_arr.astype(jnp.float32)]
    )  # f32[2] = [T, min_value]
    return pl.pallas_call(
        _dynt_kernel,
        out_shape=(
            jax.ShapeDtypeStruct((1,), jnp.float32),  # |T| + min_value
            jax.ShapeDtypeStruct((1,), jnp.float32),  # 1 / (|T| + min_value)
        ),
        in_specs=[pl.BlockSpec(memory_space=pltpu.MemorySpace.SMEM)],
        out_specs=(
            pl.BlockSpec(memory_space=pltpu.MemorySpace.SMEM),
            pl.BlockSpec(memory_space=pltpu.MemorySpace.SMEM),
        ),
        # Tell XLA this custom call is near-free so it is hoisted/overlapped
        # rather than conservatively serialized on the critical path.
        cost_estimate=pl.CostEstimate(flops=3, transcendentals=0, bytes_accessed=16),
    )(packed)


# --- differentiable wrapper (plain-JAX bwd; no second Pallas dispatch) -------
#   d(|T|+m)/dT       = sign(T)              d(|T|+m)/dm       = 1
#   d(1/(|T|+m))/dT   = -sign(T)/(|T|+m)^2   d(1/(|T|+m))/dm   = -1/(|T|+m)^2
@jax.custom_vjp
def dynt_forward(t: jax.Array, min_arr: jax.Array):
    return _dynt_pallas(t, min_arr)


def _dynt_fwd(t, min_arr):
    t_out, inv_out = _dynt_pallas(t, min_arr)
    return (t_out, inv_out), (t, t_out)


def _dynt_bwd(res, g):
    t, t_out = res
    g_t, g_inv = g
    common = g_t - g_inv / (t_out * t_out)
    # sign(0) == 0 matches PyTorch's abs() subgradient at 0.
    return (jnp.sign(t) * common, common)


dynt_forward.defvjp(_dynt_fwd, _dynt_bwd)


class DynTParams:
    """Deterministic re-implementation of DynT.__init__ parameter setup."""

    def __init__(self, init_value: float = 1.0, min_value=None):
        _init_value = abs(init_value)
        self.min_value = _init_value / 64.0 if min_value is None else min_value
        self.init_value = (
            _init_value - self.min_value if _init_value >= self.min_value else 0.0
        )
        # nn.Parameter(torch.as_tensor([self.init_value]))
        self.T = jnp.asarray([self.init_value], dtype=jnp.float32)
        self._min_arr = jnp.asarray([self.min_value], dtype=jnp.float32)

    def forward(self) -> jax.Array:
        # PyTorch forward(): T.abs() + min_value
        t_out, _ = dynt_forward(self.T, self._min_arr)
        return t_out

    def forward_with_reciprocal(self):
        # Convenience for the KD consumer: (T_eff, 1/T_eff) from one dispatch.
        return dynt_forward(self.T, self._min_arr)


if __name__ == "__main__":
    # Deterministic setup. The parameter itself is defined by __init__
    # (init_value), but we perturb it with PRNGKey(0) noise to exercise the
    # abs() path on a non-trivial (possibly negative) value, as a synthetic
    # "trained" state.
    key = jax.random.PRNGKey(0)
    module = DynTParams(init_value=1.0, min_value=None)
    noise = jax.random.normal(key, (1,), dtype=jnp.float32) * 0.1
    module.T = module.T + noise  # simulates a trained (possibly negative) T

    out = module.forward()
    out = jax.block_until_ready(out)

    # Reference check in plain JAX: |T| + min_value
    ref = jnp.abs(module.T) + jnp.float32(module.min_value)
    assert out.shape == (1,)
    assert jnp.allclose(out, ref, rtol=1e-6, atol=1e-6), (out, ref)

    # Fused reciprocal output check: 1 / (|T| + min_value)
    t_eff, inv_t = module.forward_with_reciprocal()
    inv_t = jax.block_until_ready(inv_t)
    assert jnp.allclose(inv_t, 1.0 / ref, rtol=1e-6, atol=1e-6), (inv_t, 1.0 / ref)

    # Autodiff check through the custom VJP: d(|T| + m)/dT == sign(T).
    grad_t = jax.grad(lambda t: jnp.sum(dynt_forward(t, module._min_arr)[0]))(module.T)
    grad_t = jax.block_until_ready(grad_t)
    assert jnp.allclose(grad_t, jnp.sign(module.T), rtol=1e-6, atol=1e-6), (
        grad_t,
        jnp.sign(module.T),
    )

    print("KERNEL_OK")
</pallas_src>

<mosaic_0001>
module attributes {stable_mosaic.version = 11 : i64} {
  func.func @_dynt_kernel(%arg0: memref<2xf32, #tpu.memory_space<smem>>, %arg1: memref<1xf32, #tpu.memory_space<smem>>, %arg2: memref<1xf32, #tpu.memory_space<smem>>) attributes {dimension_semantics = [], scalar_prefetch = 0 : i64, scratch_operands = 0 : i64, tpu.core_type = #tpu.core_type<tc>} {
    %c0 = arith.constant 0 : index
    %0 = memref.load %arg0[%c0] : memref<2xf32, #tpu.memory_space<smem>>
    %c1 = arith.constant 1 : index
    %1 = memref.load %arg0[%c1] : memref<2xf32, #tpu.memory_space<smem>>
    %cst = arith.constant 0.000000e+00 : f32
    %2 = arith.cmpf olt, %0, %cst : f32
    %cst_0 = arith.constant 0.000000e+00 : f32
    %3 = arith.subf %cst_0, %0 : f32
    %4 = arith.select %2, %3, %0 : f32
    %5 = arith.addf %4, %1 : f32
    %c0_1 = arith.constant 0 : index
    %6 = memref.load %arg1[%c0_1] : memref<1xf32, #tpu.memory_space<smem>>
    memref.store %5, %arg1[%c0_1] : memref<1xf32, #tpu.memory_space<smem>>
    %cst_2 = arith.constant 1.000000e+00 : f32
    %7 = arith.divf %cst_2, %5 : f32
    %c0_3 = arith.constant 0 : index
    %8 = memref.load %arg2[%c0_3] : memref<1xf32, #tpu.memory_space<smem>>
    memref.store %7, %arg2[%c0_3] : memref<1xf32, #tpu.memory_space<smem>>
    return
  }
}

</mosaic_0001>

<bundles_post_ra>
// kernel: tpu_custom_call.1
= control target key start
LH: loop header
LB: loop body
LE: loop exit
PB: predicated region body
PF: predicated region fallthrough
CT: control target
= control target key end

     0   :  { %8 = vsyncpa [#allocation3], 0  ;;  %s160_s0 = inlined_call_operand.hbm [shape: f32[2], index: 0, kind: input, shape index: {}]   ;;  %s161_s1 = inlined_call_operand.hbm [shape: f32[1], index: 1, kind: output, shape index: {0}]   ;;  %s162_s2 = inlined_call_operand.hbm [shape: f32[1], index: 2, kind: output, shape index: {1}]  }
   0x1   :  { %9 = vsyncpa [#allocation4], 0 }
   0x2   :  { %10 = vsyncpa [#allocation7], 0  ;;  %s70_s11 = scalar_lea.hbm %s160_s0, 16 }
   0x3   :  { %p71_p0 = scmp.ne.s32.totalorder %s160_s0, %s70_s11  ;;  %p74_p1 = scmp.lt.u32.totalorder %s70_s11, %s160_s0 }
   0x5   :  { %p76_p2 = pnand %p74_p1, %p71_p0 }
   0x7   :  { %79 = shalt.err (!%p76_p2)
}
   0x8   :  { %s106_s16 = smov [#allocation2]  }
   0x9   :  { %18 = dma.hbm_to_smem %s160_s0, 16, %s106_s16, [#allocation3]  }
   0xa   :  { %100 = dma.done.wait [#allocation3], 16  }
   0xb   :  { %101 = vsyncadd [#allocation3], 4294967280 }
   0xc   :  { %22 = sfence }
   0xd   :  { %s23_s19 = sld [smem:[#allocation2]]  ;;  %s62_s20 = sld [smem:[#allocation2 + $0x1]] }
   0xe   :  { %s80_s25 = scalar_lea.hbm %s161_s1, 16 }
   0xf   :  { %p81_p4 = scmp.ne.s32.totalorder %s161_s1, %s80_s25  ;;  %p84_p5 = scmp.lt.u32.totalorder %s80_s25, %s161_s1 }
  0x11   :  { %p86_p6 = pnand %p84_p5, %p81_p4 }
  0x13   :  { %p25_p3 = scmp.lt.f32.partialorder %s23_s19, 0.0  ;;  %s26_s21 = ssub.f32 0.0, %s23_s19 }
  0x15   :  { %s164_s21 = smov (!%p25_p3, %s26_s21), %s23_s19 }
  0x16   :  { %s28_s22 = sadd.f32 %s62_s20, %s164_s21 }
  0x18   :  { %v31_v0 = vstv %s28_s22  ;;  %30 = sst [smem:[#allocation5]] %s28_s22 }
  0x19   :  { %68 = vrcp.f32 %v31_v0 }
  0x1a   :  { %89 = shalt.err (!%p86_p6)
}
  0x1b   :  { %s107_s29 = smov [#allocation5]   ;;  %s90_s7 = scalar_lea.hbm %s162_s2, 16 }
  0x1c   :  { %43 = dma.smem_to_hbm %s107_s29, 16, %s161_s1, [#allocation4]  }
  0x1d   :  { %p91_p7 = scmp.ne.s32.totalorder %s162_s2, %s90_s7  ;;  %p94_p8 = scmp.lt.u32.totalorder %s90_s7, %s162_s2 }
  0x1f   :  { %p96_p9 = pnand %p94_p8, %p91_p7 }
  0x23   :  { %v69_v1 = vpop.eup %68 }
  0x24   :  { %63 = vpush %v69_v1 }
  0x55   :  { %s64_s4 = spop %63 }
  0x56   :  { %35 = sst [smem:[#allocation6]] %s64_s4 }
  0x57   :  { %99 = shalt.err (!%p96_p9)
}
  0x58   :  { %s108_s12 = smov [#allocation6]  }
  0x59   :  { %51 = dma.smem_to_hbm %s108_s12, 16, %s162_s2, [#allocation7]  }
  0x5a   :  { %102 = dma.done.wait [#allocation4], 16  }
  0x5b   :  { %103 = vsyncadd [#allocation4], 4294967280 }
  0x5c   :  { %104 = dma.done.wait [#allocation7], 16  }
  0x5d   :  { %105 = vsyncadd [#allocation7], 4294967280 }
  0x5e   :  { %58 = sfence }
  0x5f   :  { %59 = vsyncpa [#allocation3], 1 }
  0x60   :  { %60 = vsyncpa [#allocation4], 1 }
  0x61   :  { %61 = vsyncpa [#allocation7], 1 }

</bundles_post_ra>
